<compile_context>
chip_gen: v6e
topology: v6e:2x2x1
jax: 0.10.0
libtpu: 0.0.40
codegen_flags: <defaults>
</compile_context>

<pallas_src>
import functools

import jax
import jax.numpy as jnp
from jax.experimental import pallas as pl
from jax.experimental.pallas import tpu as pltpu


# --------------------------------------------------------------------------- #
# Kernel
# --------------------------------------------------------------------------- #
def _permequi2_mean_kernel(x_ref, gw_ref, lw_ref, gb_ref, o_ref, *, inv_n):
    # x_ref : (Bt, Np, Din)   activations (Bt whole batch elements, Np sublane-padded)
    # gw_ref: (Din, tn)       Gamma weight (transposed)
    # lw_ref: (Din, tn)       Lambda weight (transposed)
    # gb_ref: (1, tn)         Gamma bias
    # o_ref : (Bt, Np, tn)
    bt, n, din = x_ref.shape
    tn = gw_ref.shape[1]

    x = x_ref[...]                       # native dtype; accumulate in f32 on MXU
    gw = gw_ref[...]
    lw = lw_ref[...]

    # Gamma(x): flatten (Bt, Np) -> rows; single 2-D MXU GEMM (pure relabel
    # reshape because Np is sublane-aligned).
    y = jnp.dot(x.reshape(bt * n, din), gw,
                preferred_element_type=jnp.float32)             # (Bt*Np, tn) f32
    y = y.reshape(bt, n, tn)

    # Lambda(mean_N(x)): f32 sum-reduction (no f32 copy of the whole block),
    # then a tiny (Bt, Din) @ (Din, tn) GEMM.  inv_n uses the TRUE N, so any
    # zero-padded rows do not perturb the mean.
    xs = jnp.sum(x, axis=1, dtype=jnp.float32) * inv_n          # (Bt, Din) f32
    xm_l = jnp.dot(xs.astype(x.dtype), lw,
                   preferred_element_type=jnp.float32)          # (Bt, tn) f32

    # Fold bias and Lambda term into one per-batch offset (one VALU pass).
    off = gb_ref[...].astype(jnp.float32) - xm_l                # (Bt, tn) f32
    o_ref[...] = (y + off[:, None, :]).astype(o_ref.dtype)


# --------------------------------------------------------------------------- #
# VMEM accounting / tile selection
# --------------------------------------------------------------------------- #
def _pad_to(v, m):
    return (v + m - 1) // m * m


def _sublane(itemsize):
    # sublane pack: 8 for f32, 16 for bf16, 32 for int8
    return 8 * max(1, 4 // max(1, itemsize))


def _block_bytes(shape, itemsize):
    """VMEM footprint of one block, accounting for (sublane, lane) tile padding."""
    if len(shape) == 1:
        lead, s, l = 1, 1, shape[0]
    else:
        lead = 1
        for d in shape[:-2]:
            lead *= d
        s, l = shape[-2], shape[-1]
    return lead * _pad_to(s, _sublane(itemsize)) * _pad_to(l, 128) * itemsize


def _vmem_limits():
    """(vmem_limit_bytes, planning budget) derived from the actual chip.

    128 MiB physical on v5e/v6e -> ~96 MiB limit; 64 MiB/TC on v7x -> ~48 MiB.
    Falls back to a v7x-safe value if the query is unavailable.
    """
    try:
        cap = pltpu.get_tpu_info().vmem_capacity_bytes
    except Exception:
        cap = 64 * 1024 * 1024
    limit = min(cap * 3 // 4, 100 * 1024 * 1024)
    budget = limit * 4 // 5
    return int(limit), int(budget)


def _pick_dout_tile(din, dout, w_itemsize, budget):
    """Full Dout when the (single-buffered) weights fit comfortably; otherwise
    lane-dense 128-multiple Dout tiles so weight blocks stay within ~1/3 of the
    budget (they become double-buffered once they vary across the grid)."""
    full = 2 * _block_bytes((din, dout), w_itemsize) + _block_bytes((1, dout), w_itemsize)
    if dout <= 128 or full <= budget // 3:
        return dout, 1
    tn = 128
    while 2 * tn < dout and 2 * 2 * _block_bytes((din, 2 * tn), w_itemsize) <= budget // 3:
        tn *= 2
    return tn, pl.cdiv(dout, tn)


def _pick_batch_tile(B, Np, din, tn, nj, x_itemsize, w_itemsize, budget):
    """Whole-batch row tiles: aim for ~1-2K flattened rows (Bt*Np) per grid
    step, shrinking Bt until the double-buffered block footprint (with tile
    padding) fits the budget.  Bt is capped at ceil(B/2) so the grid always
    has >= 2 steps (keeps both v7x TensorCores busy)."""
    target_rows = 2048 if budget >= 64 * 1024 * 1024 else 1024
    wbuf = 1 if nj == 1 else 2        # weights single-buffered when constant
    w_bytes = wbuf * (2 * _block_bytes((din, tn), w_itemsize)
                      + _block_bytes((1, tn), w_itemsize))

    def usage(bt):
        xb = _block_bytes((bt, Np, din), x_itemsize)
        ob = _block_bytes((bt, Np, tn), x_itemsize)
        tmp = (_block_bytes((bt, Np, tn), 4)        # f32 GEMM result
               + _block_bytes((bt, din), 4)         # f32 mean
               + _block_bytes((bt, tn), 4))         # f32 offset
        return 2 * (xb + ob) + w_bytes + tmp

    bt = max(1, min(B, pl.cdiv(target_rows, Np)))
    if B > 1:
        bt = min(bt, pl.cdiv(B, 2))   # guarantee >= 2 grid steps (v7x megacore)
    while bt > 1 and usage(bt) > budget:
        bt = (bt + 1) // 2
    # Prefer a bt that divides B (no wasted compute on a ragged last block)
    # as long as it does not shrink the tile by more than 2x.
    if B % bt != 0:
        for d in range(bt, 0, -1):
            if B % d == 0:
                if d * 2 >= bt:
                    bt = d
                break
    # TODO(synk): if usage(1) still exceeds the budget (huge N*Din), fall back
    # to an N-tiled two-pass mean (prologue reduction) + K-tiled Gamma GEMM;
    # not needed at these shapes.
    return bt


# --------------------------------------------------------------------------- #
# Wrapper
# --------------------------------------------------------------------------- #
def permequi2_mean(x, gamma_w, gamma_b, lambda_w):
    """x: (B, N, Din); gamma_w / lambda_w: (Din, Dout); gamma_b: (Dout,)."""
    B, N, Din = x.shape
    Dout = gamma_w.shape[1]

    vmem_limit, vmem_budget = _vmem_limits()

    # Pad N up to the sublane pack so the in-kernel flatten is a pure relabel.
    sub = _sublane(x.dtype.itemsize)
    Np = _pad_to(N, sub)
    xp = jnp.pad(x, ((0, 0), (0, Np - N), (0, 0))) if Np != N else x

    tn, nj = _pick_dout_tile(Din, Dout, gamma_w.dtype.itemsize, vmem_budget)
    bt = _pick_batch_tile(B, Np, Din, tn, nj,
                          x.dtype.itemsize, gamma_w.dtype.itemsize, vmem_budget)
    nb = pl.cdiv(B, bt)

    gb2 = gamma_b.reshape(1, Dout)

    # Constant-index weight/bias blocks -> single buffer; varying (nj > 1) ->
    # default double buffering.
    w_pipe = pl.Buffered(1) if nj == 1 else None

    kernel = functools.partial(_permequi2_mean_kernel, inv_n=1.0 / N)

    flops = 2 * B * Np * Din * Dout + 2 * B * Din * Dout * nj
    bytes_accessed = (xp.size * xp.dtype.itemsize
                      + nb * 2 * Din * Dout * gamma_w.dtype.itemsize
                      + Dout * gamma_b.dtype.itemsize
                      + B * Np * Dout * x.dtype.itemsize)

    out = pl.pallas_call(
        kernel,
        out_shape=jax.ShapeDtypeStruct((B, Np, Dout), x.dtype),
        grid_spec=pltpu.PrefetchScalarGridSpec(
            num_scalar_prefetch=0,
            grid=(nb, nj),
            in_specs=[
                pl.BlockSpec((bt, Np, Din), lambda i, j: (i, 0, 0)),
                pl.BlockSpec((Din, tn), lambda i, j: (0, j), pipeline_mode=w_pipe),
                pl.BlockSpec((Din, tn), lambda i, j: (0, j), pipeline_mode=w_pipe),
                pl.BlockSpec((1, tn), lambda i, j: (0, j), pipeline_mode=w_pipe),
            ],
            out_specs=pl.BlockSpec((bt, Np, tn), lambda i, j: (i, 0, j)),
        ),
        compiler_params=pltpu.CompilerParams(
            dimension_semantics=("parallel", "arbitrary"),
            vmem_limit_bytes=vmem_limit,
        ),
        cost_estimate=pl.CostEstimate(
            flops=int(flops), transcendentals=0, bytes_accessed=int(bytes_accessed)),
    )(xp, gamma_w, lambda_w, gb2)

    if Np != N:
        out = out[:, :N, :]
    return out


def permequi2_mean_ref(x, gamma_w, gamma_b, lambda_w):
    xm = jnp.mean(x, axis=1, keepdims=True)
    xm = xm @ lambda_w
    xg = x @ gamma_w + gamma_b
    return xg - xm


if __name__ == "__main__":
    key = jax.random.PRNGKey(0)
    k_x, k_gw, k_gb, k_lw = jax.random.split(key, 4)

    B, N, Din, Dout = 2, 8, 32, 32   # small shapes consistent with the module

    x = jax.random.normal(k_x, (B, N, Din), dtype=jnp.float32)
    # Deterministic synthetic parameters, stored as (Din, Dout) = W.T of nn.Linear
    bound = 1.0 / (Din ** 0.5)
    gamma_w = jax.random.uniform(k_gw, (Din, Dout), jnp.float32, -bound, bound)
    gamma_b = jax.random.uniform(k_gb, (Dout,), jnp.float32, -bound, bound)
    lambda_w = jax.random.uniform(k_lw, (Din, Dout), jnp.float32, -bound, bound)

    out = permequi2_mean(x, gamma_w, gamma_b, lambda_w)
    out = jax.block_until_ready(out)

    ref = permequi2_mean_ref(x, gamma_w, gamma_b, lambda_w)
    assert out.shape == (B, N, Dout)
    assert jnp.allclose(out, ref, atol=1e-5, rtol=1e-5), "mismatch vs reference"

    print("KERNEL_OK")
</pallas_src>

<mosaic_0001>
module attributes {stable_mosaic.version = 11 : i64} {
  func.func @_permequi2_mean_kernel(%arg0: i32, %arg1: i32, %arg2: memref<1x8x32xf32, #tpu.memory_space<vmem>>, %arg3: memref<32x32xf32, #tpu.memory_space<vmem>>, %arg4: memref<32x32xf32, #tpu.memory_space<vmem>>, %arg5: memref<1x32xf32, #tpu.memory_space<vmem>>, %arg6: memref<1x8x32xf32, #tpu.memory_space<vmem>>) attributes {dimension_semantics = [#tpu.dimension_semantics<parallel>, #tpu.dimension_semantics<arbitrary>], iteration_bounds = array<i64: 2, 1>, scalar_prefetch = 0 : i64, scratch_operands = 0 : i64, tpu.core_type = #tpu.core_type<tc>, window_params = [{transform_indices = @transform_0, window_bounds = array<i64: 1, 8, 32>}, {pipeline_mode = #tpu.pipeline_mode<synchronous>, transform_indices = @transform_1, window_bounds = array<i64: 32, 32>}, {pipeline_mode = #tpu.pipeline_mode<synchronous>, transform_indices = @transform_2, window_bounds = array<i64: 32, 32>}, {pipeline_mode = #tpu.pipeline_mode<synchronous>, transform_indices = @transform_3, window_bounds = array<i64: 1, 32>}, {transform_indices = @transform_4, window_bounds = array<i64: 1, 8, 32>}]} {
    %c0 = arith.constant 0 : index
    %c0_0 = arith.constant 0 : index
    %c0_1 = arith.constant 0 : index
    %0 = vector.load %arg2[%c0, %c0_0, %c0_1] : memref<1x8x32xf32, #tpu.memory_space<vmem>>, vector<1x8x32xf32>
    %c0_2 = arith.constant 0 : index
    %c0_3 = arith.constant 0 : index
    %1 = vector.load %arg3[%c0_2, %c0_3] : memref<32x32xf32, #tpu.memory_space<vmem>>, vector<32x32xf32>
    %c0_4 = arith.constant 0 : index
    %c0_5 = arith.constant 0 : index
    %2 = vector.load %arg4[%c0_4, %c0_5] : memref<32x32xf32, #tpu.memory_space<vmem>>, vector<32x32xf32>
    %3 = vector.shape_cast %0 : vector<1x8x32xf32> to vector<8x32xf32>
    %cst = arith.constant dense<0.000000e+00> : vector<8x32xf32>
    %4 = tpu.matmul %3, %1, %cst {dimension_numbers = #tpu.dot_dimension_numbers<[1], [0], [0], [1], [0, 0, 1, 1], [], []>} : vector<8x32xf32>, vector<32x32xf32>, vector<8x32xf32> -> vector<8x32xf32>
    %5 = vector.shape_cast %4 : vector<8x32xf32> to vector<1x8x32xf32>
    %cst_6 = arith.constant dense<0.000000e+00> : vector<1x32xf32>
    %6 = vector.multi_reduction <add>, %0, %cst_6 [1] : vector<1x8x32xf32> to vector<1x32xf32>
    %cst_7 = arith.constant 1.250000e-01 : f32
    %7 = vector.broadcast %cst_7 : f32 to vector<1x32xf32>
    %8 = arith.mulf %6, %7 : vector<1x32xf32>
    %cst_8 = arith.constant dense<0.000000e+00> : vector<1x32xf32>
    %9 = tpu.matmul %8, %2, %cst_8 {dimension_numbers = #tpu.dot_dimension_numbers<[1], [0], [0], [1], [0, 0, 1, 1], [], []>} : vector<1x32xf32>, vector<32x32xf32>, vector<1x32xf32> -> vector<1x32xf32>
    %c0_9 = arith.constant 0 : index
    %c0_10 = arith.constant 0 : index
    %10 = vector.load %arg5[%c0_9, %c0_10] : memref<1x32xf32, #tpu.memory_space<vmem>>, vector<1x32xf32>
    %11 = arith.subf %10, %9 : vector<1x32xf32>
    %12 = vector.shape_cast %11 : vector<1x32xf32> to vector<1x1x32xf32>
    %13 = vector.broadcast %12 : vector<1x1x32xf32> to vector<1x8x32xf32>
    %14 = arith.addf %5, %13 : vector<1x8x32xf32>
    %c0_11 = arith.constant 0 : index
    %c0_12 = arith.constant 0 : index
    %c0_13 = arith.constant 0 : index
    %15 = vector.load %arg6[%c0_11, %c0_12, %c0_13] : memref<1x8x32xf32, #tpu.memory_space<vmem>>, vector<1x8x32xf32>
    tpu.vector_store %arg6[%c0_11, %c0_12, %c0_13], %14 {strides = array<i32>} : memref<1x8x32xf32, #tpu.memory_space<vmem>>, vector<1x8x32xf32>,
    return
  }
  func.func @transform_0(%arg0: i32, %arg1: i32) -> (i32, i32, i32) {
    %c0_i32 = arith.constant 0 : i32
    %c0_i32_0 = arith.constant 0 : i32
    %c0_i32_1 = arith.constant 0 : i32
    return %arg0, %c0_i32, %c0_i32_0 : i32, i32, i32
  }
  func.func @transform_1(%arg0: i32, %arg1: i32) -> (i32, i32) {
    %c0_i32 = arith.constant 0 : i32
    %c0_i32_0 = arith.constant 0 : i32
    return %c0_i32, %arg1 : i32, i32
  }
  func.func @transform_2(%arg0: i32, %arg1: i32) -> (i32, i32) {
    %c0_i32 = arith.constant 0 : i32
    %c0_i32_0 = arith.constant 0 : i32
    return %c0_i32, %arg1 : i32, i32
  }
  func.func @transform_3(%arg0: i32, %arg1: i32) -> (i32, i32) {
    %c0_i32 = arith.constant 0 : i32
    %c0_i32_0 = arith.constant 0 : i32
    return %c0_i32, %arg1 : i32, i32
  }
  func.func @transform_4(%arg0: i32, %arg1: i32) -> (i32, i32, i32) {
    %c0_i32 = arith.constant 0 : i32
    %c0_i32_0 = arith.constant 0 : i32
    return %arg0, %c0_i32, %arg1 : i32, i32, i32
  }
}

</mosaic_0001>

<bundles_post_ra>
// kernel: tpu_custom_call.1
= control target key start
LH: loop header
LB: loop body
LE: loop exit
PB: predicated region body
PF: predicated region fallthrough
CT: control target
= control target key end

     0   :  { %9 = vsyncpa [#allocation3], 0  ;;  %s1110_s0 = inlined_call_operand.hbm [shape: f32[2,8,32], index: 0, kind: input, shape index: {}]   ;;  %s1111_s1 = inlined_call_operand.hbm [shape: f32[32,32], index: 1, kind: input, shape index: {}]   ;;  %s1112_s2 = inlined_call_operand.hbm [shape: f32[32,32], index: 2, kind: input, shape index: {}]   ;;  %s1113_s3 = inlined_call_operand.vmem [shape: f32[1,32], index: 3, kind: input, shape index: {}]   ;;  %s1114_s4 = inlined_call_operand.hbm [shape: f32[2,8,32], index: 4, kind: output, shape index: {}]  }
   0x1   :  { %11 = vsyncpa [#allocation3 + $0x1], 0 }
   0x2   :  { %12 = vsyncpa [#allocation6], 0 }
   0x3   :  { %13 = vsyncpa [#allocation4], 0 }
   0x4   :  { %15 = vsyncpa [#allocation4 + $0x1], 0  ;;  %s925_s15 = smov 0   ;;  %s927_s16 = smov 0  }
   0x5   :  { %s929_s17 = smov 0   ;;  %s931_s18 = smov 0  }
   0x6   :  { %s933_s19 = smov 0   ;;  %s935_s20 = smov 0  }
   0x7 LB: > { %s587_s21 = sadd.s32 4294967295, %s890_s20   ;;  %s588_s22 = sadd.s32 4294967294, %s890_s20   ;;  %s890_s20 = sphi %s935_s20, %s21_s20   ;;  %s886_s19 = sphi %s933_s19, %s1134_s19   ;;  %s882_s18 = sphi %s931_s18, %s1133_s18   ;;  %s878_s17 = sphi %s929_s17, %s1132_s17   ;;  %s874_s16 = sphi %s927_s16, %s1131_s16   ;;  %s870_s15 = sphi %s925_s15, %s1130_s15  }
   0x8   : > { %p53_p0 = scmp.ne.s32.totalorder %s874_s16, %s870_s15  ;;  %p959_p1 = scmp.eq.s32.totalorder %s587_s21, 0 }
   0x9   : > { %p963_p2 = scmp.eq.s32.totalorder %s587_s21, 1  ;;  %p163_p3 = scmp.eq.s32.totalorder %s588_s22, 1 }
   0xa   : > { %s1118_s23 = scalar_select %p959_p1, 1, 0 }
   0xb   : > { %p969_p4 = por %p959_p1, %p53_p0  ;;  %p589_p5 = scmp.ge.s32.totalorder %s890_s20, 1 }
   0xc   : > { %p974_p6 = por %p163_p3, %p53_p0  ;;  %p170_p7 = scmp.lt.s32.totalorder %s890_s20, 3 }
   0xd   : > { %s1120_s25 = scalar_select %p969_p4, 1, 0 }
   0xe   : > { %s1121_s26 = scalar_select %p974_p6, 1, 0 }
   0xf   : > { %p979_p8 = pnand %p589_p5, %p170_p7  ;;  %s892_s28 = smov [#allocation5]  }
  0x10   : > { %s184_s29 = sshll.u32 %s892_s28, 4  ;;  %s893_s5 = smov [#allocation7]   ;;  %s185_s29 = int_to_ptr.vmem [resolvable:$true] %s184_s29 }
  0x11   : > { %p651_p9 = pneg %p979_p8  ;;  %s199_s6 = sshll.u32 %s893_s5, 4  ;;  %s200_s6 = int_to_ptr.vmem [resolvable:$true] %s199_s6 }
  0x12   : > { %s737_s7 = scalar_lea.vmem %s185_s29, 512  ;;  %p745_p5 = scmp.lt.s32.totalorder %s185_s29, %s185_s29 }
  0x13   : > { %p988_p11 = pnand %p651_p9, %p959_p1  ;;  %p738_p13 = scmp.ne.s32.totalorder %s185_s29, %s737_s7 }
  0x14   : > { %p746_p7 = scmp.lt.s32.totalorder %s737_s7, %s737_s7 }
  0x15   : > { %p728_p12 = pneg %p988_p11 }
  0x16   : > { %p747_p10 = por %p746_p7, %p745_p5 }
  0x17   : > { %p740_p0 = pnand %p738_p13, %p728_p12 }
  0x19   : > { %p741_p3 = pneg %p740_p0 }
  0x1b   : > { %p748_p9 = pnand %p747_p10, %p741_p3 }
  0x1d   : > { %751 = shalt.err (!%p748_p9)
}
  0x1e   : > { %s894_s8 = smov 128   ;;  %s895_s9 = smov 8  }
  0x1f   : > { %654 = dma.hbm_to_vmem [thread:$0]  (!%p988_p11), %s1111_s1, 512, %s185_s29, [#allocation6], %s894_s8, %s894_s8, %s895_s9  }
  0x20   : > { %s763_s12 = scalar_lea.vmem %s200_s6, 512  ;;  %p771_p1 = scmp.lt.s32.totalorder %s200_s6, %s200_s6 }
  0x21   : > { %p764_p6 = scmp.ne.s32.totalorder %s200_s6, %s763_s12  ;;  %p772_p4 = scmp.lt.s32.totalorder %s763_s12, %s763_s12 }
  0x23   : > { %p766_p13 = pnand %p764_p6, %p728_p12  ;;  %p773_p5 = por %p772_p4, %p771_p1 }
  0x25   : > { %p767_p0 = pneg %p766_p13 }
  0x27   : > { %p774_p10 = pnand %p773_p5, %p767_p0 }
  0x29   : > { %777 = shalt.err (!%p774_p10)
}
  0x2a   : > { %657 = dma.hbm_to_vmem [thread:$0]  (!%p988_p11), %s1112_s2, 512, %s200_s6, [#allocation6], %s894_s8, %s894_s8, %s895_s9  }
  0x2b   : > { %s33_s21 = sadd.s32 1, %s886_s19  ;;  %s40_s22 = sadd.s32 1, %s878_s17 }
  0x2c   : > { %p35_p1 = scmp.ge.s32.totalorder %s33_s21, 2  ;;  %p47_p4 = scmp.ne.s32.totalorder %s878_s17, %s874_s16 }
  0x2d   : > { %p48_p6 = scmp.eq.s32.totalorder %s890_s20, 0  ;;  %p668_p12 = scmp.lt.s32.totalorder %s890_s20, 2 }
  0x2e   : > { %s1136_s21 = smov (%p35_p1, %s33_s21), 0  ;;  %p1020_p7 = por %p963_p2, %p47_p4 }
  0x2f   : > { %p49_p3 = por %p48_p6, %p47_p4  ;;  %s37_s29 = ssub.s32 %s886_s19, %s1136_s21 }
  0x30   : > { %s219_s30 = sand.u32 1, %s878_s17   ;;  %p38_p9 = scmp.eq.s32.totalorder %s37_s29, 0 }
  0x31   : > { %s594_s5 = sshll.u32 %s219_s30, 3  ;;  %s595_s6 = sshll.u32 %s886_s19, 7 }
  0x32   : > { %s1029_s7 = scalar_select %p38_p9, %s878_s17, %s40_s22  }
  0x33   : > { %s228_s10 = scalar_lea.hbm %s1110_s0, %s595_s6  ;;  %s223_s11 = scalar_lea.vmem [#allocation2], %s594_s5 }
  0x34   : > { %s230_s12 = sshll.u32 %s223_s11, 4  ;;  %p1036_p11 = pnand %p668_p12, %p49_p3  ;;  %s231_s12 = int_to_ptr.vmem [resolvable:$true] %s230_s12 }
  0x35   : > { %s220_s13 = scalar_lea.sflag [#allocation3], %s219_s30  ;;  %s791_s14 = scalar_lea.vmem %s231_s12, 128 }
  0x36   : > { %p780_p2 = pneg %p1036_p11  ;;  %p792_p13 = scmp.ne.s32.totalorder %s231_s12, %s791_s14 }
  0x37   : > { %s896_s22 = smov [#allocation2]  }
  0x38   : > { %p794_p0 = pnand %p792_p13, %p780_p2  ;;  %s796_s29 = sshll.u32 %s896_s22, 4  ;;  %s797_s29 = int_to_ptr.vmem [resolvable:$false] %s796_s29 }
  0x39   : > { %s798_s6 = scalar_lea.vmem %s797_s29, 256  ;;  %p799_p10 = scmp.lt.s32.totalorder %s231_s12, %s797_s29 }
  0x3a   : > { %p795_p5 = pneg %p794_p0  ;;  %p800_p1 = scmp.lt.s32.totalorder %s798_s6, %s791_s14 }
  0x3c   : > { %p801_p4 = por %p800_p1, %p799_p10 }
  0x3e   : > { %p802_p6 = pnand %p801_p4, %p795_p5 }
  0x40   : > { %805 = shalt.err (!%p802_p6)
}
  0x41   : > { %661 = dma.hbm_to_vmem [thread:$0]  (!%p1036_p11), %s228_s10, 128, %s231_s12, %s220_s13  }
  0x42   : > { %239 = sbr.rel (%p979_p8) target bundleno = 305 (0x131), region = 36  ;;  %s1047_s30 = sand.u32 (!%p979_p8), 1, %s874_s16  }
  0x43   : > { %s597_s5 = sshll.u32 (!%p979_p8), %s1047_s30, 3  ;;  %s242_s8 = scalar_lea.sflag (!%p979_p8), [#allocation3], %s1047_s30 }
  0x44   : > { %s245_s9 = scalar_lea.vmem (!%p979_p8), [#allocation2], %s597_s5  ;;  %p1126_p12 = scmp.ne.s32.totalorder (!%p979_p8), %s1120_s25, 0 }
  0x47   : > { %857 = dma.done.wait (%p1126_p12), %s242_s8, 128  }
  0x48   : > { %859 = vsyncadd (%p1126_p12), %s242_s8, 4294967168  ;;  %p1127_p3 = scmp.ne.s32.totalorder %s1118_s23, 0 }
  0x4a   : > { %861 = dma.done.wait (%p1127_p3), [#allocation6], 1024  }
  0x4b   : > { %863 = vsyncadd (%p1127_p3), [#allocation6], 4294966272  ;;  %v897_v0 = vmov 0.0   ;;  %vm898_vm0 = vmmov 0   ;;  %v292_v1 = vld [vmem:[#allocation7 + $0x18] sm:$0xff]  ;;  %v291_v3 = vld [vmem:[#allocation7 + $0x10] sm:$0xff]  ;;  %v451_v19 = vlaneseq }
  0x4c   : > { %628 = vmatprep.subr.mxu1 %v897_v0  ;;  %617 = vmatprep.subr.mxu0 %v897_v0  ;;  %v288_v2 = vld [vmem:[#allocation5 + $0x18] sm:$0xff]  ;;  %vm293_vm1 = vcmask 261120   ;;  %v287_v4 = vld [vmem:[#allocation5 + $0x10] sm:$0xff]  ;;  %v290_v5 = vld [vmem:[#allocation7 + $0x8] sm:$0xff]  ;;  %s604_s27 = sshll.u32 %s882_s18, 7  ;;  %s280_s10 = scalar_lea.vmem [#allocation8], %s597_s5 }
  0x4d   : > { %636 = vmatprep.mubr.msk.f32.mxu1 %vm898_vm0, %v897_v0  ;;  %625 = vmatprep.mubr.msk.f32.mxu0 %vm898_vm0, %v897_v0  ;;  %v286_v6 = vld [vmem:[#allocation5 + $0x8] sm:$0xff]  ;;  %v284_v7 = vld [vmem:[%s245_s9] sm:$0xff]  ;;  %v289_v9 = vld [vmem:[#allocation7] sm:$0xff]  ;;  %v452_v21 = vshrl.u32 %v451_v19, 7  ;;  %s473_s11 = sshll.u32 %s280_s10, 4  ;;  %s471_s13 = scalar_lea.hbm %s1114_s4, %s604_s27  ;;  %s474_s11 = int_to_ptr.vmem [resolvable:$true] %s473_s11 }
  0x4e   : > { %629 = vmatpush3.msra.mxu1 %v292_v1  ;;  %618 = vmatpush3.msra.mxu0 %v288_v2  ;;  %v367_v8 = vsel %vm293_vm1, %v284_v7, 0.0  ;;  %v285_v11 = vld [vmem:[#allocation5] sm:$0xff]  ;;  %v448_v22 = vld [vmem:[%s1113_s3] sm:$0x1]  ;;  %s459_s14 = scalar_lea.sflag [#allocation4], %s1047_s30  ;;  %s806_s22 = scalar_lea.vmem %s474_s11, 128 }
  0x4f   : > { %630 = vmatprep.subr.mxu1 %v897_v0  ;;  %619 = vmatprep.subr.mxu0 %v897_v0  ;;  %v368_v10 = vrot.slane %v367_v8, 4  ;;  %v453_v23 = vsub.s32 0, %v452_v21  ;;  %p807_p8 = scmp.ne.s32.totalorder %s474_s11, %s806_s22  ;;  %s899_s29 = smov [#allocation8]  }
  0x50   : > { %631 = vmatpush3.msra.mxu1 %v291_v3  ;;  %620 = vmatpush3.msra.mxu0 %v287_v4  ;;  %s810_s18 = sshll.u32 %s899_s29, 4  ;;  %s811_s18 = int_to_ptr.vmem [resolvable:$false] %s810_s18 }
  0x51   : > { %632 = vmatprep.subr.mxu1 %v897_v0  ;;  %621 = vmatprep.subr.mxu0 %v897_v0  ;;  %v369_v12 = vadd.f32 %v368_v10, %v367_v8  ;;  %p808_p9 = pnand %p807_p8, %p1020_p7  ;;  %s812_s6 = scalar_lea.vmem %s811_s18, 256 }
  0x52   : > { %633 = vmatpush3.msra.mxu1 %v290_v5  ;;  %622 = vmatpush3.msra.mxu0 %v286_v6  ;;  %p813_p2 = scmp.lt.s32.totalorder %s474_s11, %s811_s18  ;;  %p814_p13 = scmp.lt.s32.totalorder %s812_s6, %s806_s22 }
  0x53   : > { %634 = vmatprep.subr.mxu1 %v897_v0  ;;  %623 = vmatprep.subr.mxu0 %v897_v0  ;;  %v370_v13 = vrot.slane %v369_v12, 2  ;;  %p809_p11 = pneg %p808_p9 }
  0x54   : > { %635 = vmatpush3.msra.mxu1 %v289_v9  ;;  %624 = vmatpush3.msra.mxu0 %v285_v11  ;;  %p815_p0 = por %p814_p13, %p813_p2 }
  0x55   : > { %626 = vmatmul.mubr.msk.f32.vlgmr.msra.gmra.mxu0 %vm293_vm1, %v284_v7  ;;  %v371_v14 = vadd.f32 %v370_v13, %v369_v12 }
  0x56   : > { %p816_p5 = pnand %p815_p0, %p809_p11 }
  0x57   : > { %v372_v15 = vrot.slane %v371_v14, 1 }
  0x59   : > { %v373_v16 = vadd.f32 %v372_v15, %v371_v14 }
  0x5b   : > { %v374_v17 = vmul.f32 0.125, %v373_v16 }
  0x5d   : > { %637 = vmatmul.mubr.msk.f32.vlgmr.msra.gmra.mxu1 %vm293_vm1, %v374_v17 }
 0x115   : > { %v363_v18 = vpop.f32.mrf.mxu0 }
 0x117   : > { %v627_v20 = vpop.f32.mrf.mxu0 }
 0x11d   : > { %v444_v24 = vpop.f32.mrf.mxu1 }
 0x11e   : > { %v449_v25 = vsub.f32 %v448_v22, %v444_v24 }
 0x11f   : > { %v638_v26 = vpop.f32.mrf.mxu1 }
 0x120   : > { %v454_v27 = vrot.slane %v449_v25, %v453_v23 }
 0x122   : > { %v456_v28 = vadd.f32 %v454_v27, %v363_v18 }
 0x124   : > { %457 = vst.msk [vmem:[%s280_s10] sm:$0xff] %vm293_vm1, %v456_v28 }
 0x125   : > { %819 = shalt.err (!%p816_p5)
}
 0x126   : > { %s820_s5 = scalar_lea.hbm %s471_s13, 128  ;;  %s824_s9 = scalar_lea.hbm %s1114_s4, 256 }
 0x127   : > { %p821_p10 = scmp.ne.s32.totalorder %s471_s13, %s820_s5  ;;  %p825_p6 = scmp.lt.s32.totalorder %s471_s13, %s1114_s4 }
 0x128   : > { %p826_p12 = scmp.lt.s32.totalorder %s824_s9, %s820_s5 }
 0x129   : > { %p822_p1 = pnand %p821_p10, %p1020_p7 }
 0x12a   : > { %p827_p3 = por %p826_p12, %p825_p6 }
 0x12b   : > { %p823_p4 = pneg %p822_p1 }
 0x12d   : > { %p828_p8 = pnand %p827_p3, %p823_p4 }
 0x12f   : > { %831 = shalt.err (!%p828_p8)
}
 0x130   : > { %649 = dma.vmem_to_hbm [thread:$0]  (%p1020_p7), %s474_s11, 128, %s471_s13, %s459_s14  }
 0x131 PF: > { %s485_s27 = sand.u32 1, %s870_s15   ;;  %p1128_p9 = scmp.ne.s32.totalorder %s1121_s26, 0 }
 0x132   : > { %p1129_p11 = scmp.ge.s32.totalorder %s890_s20, 2  ;;  %s486_s10 = scalar_lea.sflag [#allocation4], %s485_s27 }
 0x134   : > { %p663_p2 = pnand %p1129_p11, %p1128_p9 }
 0x136   : > { %p664_p13 = pneg %p663_p2 }
 0x138   : > { %865 = dma.done.wait (%p664_p13), %s486_s10, 128  }
 0x139   : > { %867 = vsyncadd (%p664_p13), %s486_s10, 4294967168  ;;  %s21_s20 = sadd.s32 1, %s890_s20   ;;  %s1130_s15 = smov %s874_s16 }
 0x13a   : > { %p18_p0 = scmp.ge.s32.totalorder %s21_s20, 4   ;;  %s1131_s16 = smov %s878_s17 }
 0x13b   : > { %s1132_s17 = smov %s1029_s7  ;;  %s1133_s18 = smov %s886_s19 }
 0x13c   : > { %s1134_s19 = smov %s1136_s21  ;;  %20 = sbr.rel (!%p18_p0) target bundleno = 7 (0x7), region = 94 }
 0x141   :  { %491 = vsyncpa [#allocation3], 1 }
 0x142   :  { %493 = vsyncpa [#allocation3 + $0x1], 1 }
 0x143   :  { %494 = vsyncpa [#allocation6], 1 }
 0x144   :  { %495 = vsyncpa [#allocation4], 1 }
 0x145   :  { %497 = vsyncpa [#allocation4 + $0x1], 1 }

</bundles_post_ra>
